<compile_context>
chip_gen: v5e
topology: v5e:2x2
jax: 0.10.0
libtpu: 0.0.40
codegen_flags: <defaults>
</compile_context>

<pallas_src>
import functools

import jax
import jax.numpy as jnp
from jax.experimental import pallas as pl
from jax.experimental.pallas import tpu as pltpu

STATE_DIM = 2
HIDDEN = 64
ACTION_DIM = 4
N_HEADS = ACTION_DIM + 1          # fused [pi | v] head width
ROW = 16                          # batch-row granularity (covers bf16 (16,128) tiling)


def _round_up(x, m):
    return ((x + m - 1) // m) * m


def _ppo_kernel(x_ref, w1_ref, b1_ref, w2_ref, b2_ref, wh_ref, bh_ref,
                hid_ref, probs_ref, val_ref):
    x = x_ref[...]                                   # [TB, 2]  f32
    w1 = w1_ref[...]                                 # [2, 64]

    # --- fc1 + ReLU on the VPU (K=2 contraction as two broadcast FMAs) ---
    h1 = x[:, 0:1] * w1[0:1, :] + x[:, 1:2] * w1[1:2, :] + b1_ref[...]
    h1 = jnp.maximum(h1, 0.0)                        # [TB, 64]

    # --- fc2 + ReLU on the MXU ---
    h2 = jnp.dot(h1, w2_ref[...], preferred_element_type=jnp.float32) + b2_ref[...]
    h2 = jnp.maximum(h2, 0.0)                        # [TB, 64]
    hid_ref[...] = h2.astype(hid_ref.dtype)          # bf16 writeback (dominant traffic)

    # --- fused heads: [wpi | wv] -> [TB, 5] in one MXU pass, one bias add ---
    heads = jnp.dot(h2, wh_ref[...], preferred_element_type=jnp.float32) + bh_ref[...]
    logits = heads[:, 0:ACTION_DIM]                  # [TB, 4]
    val_ref[...] = heads[:, ACTION_DIM:N_HEADS].astype(val_ref.dtype)

    # --- softmax (max-subtracted); EXACT reciprocal on the EUP ---
    m = jnp.max(logits, axis=-1, keepdims=True)
    e = jnp.exp(logits - m)
    inv = pl.reciprocal(jnp.sum(e, axis=-1, keepdims=True))   # approx=False (exact)
    probs_ref[...] = (e * inv).astype(probs_ref.dtype)


@functools.partial(jax.jit, static_argnames=("tb", "hidden_dtype"))
def ppo_forward_pallas(x, params, *, tb=2048, hidden_dtype=jnp.bfloat16):
    """PPO trunk + both heads in one Pallas kernel.

    Args:
      x: [B, STATE_DIM] float32
      params: dict with w1[in,out], b1[1,out], w2, b2, wpi, bpi, wv, bv
    Returns:
      (hidden [B, 64] hidden_dtype, probs [B, ACTION_DIM] f32, value [B, 1] f32)
    """
    B = x.shape[0]

    # --- batch tiling: biggest tile that fits, but >= 2 balanced blocks when possible
    B8 = _round_up(B, ROW)
    TB = min(_round_up(tb, ROW), B8)
    if B8 >= 2 * ROW and pl.cdiv(B8, TB) < 2:
        TB = _round_up(pl.cdiv(B8, 2), ROW)          # feed both v7x TensorCores
    B_pad = _round_up(B8, TB)
    if B_pad != B:
        x = jnp.pad(x, ((0, B_pad - B), (0, 0)))
    n_blocks = B_pad // TB

    # Fuse the two heads in the wrapper (one MXU pass, one bias add in-kernel).
    w_heads = jnp.concatenate([params["wpi"], params["wv"]], axis=1)   # [64, 5]
    b_heads = jnp.concatenate([params["bpi"], params["bv"]], axis=1)   # [1, 5]

    h_item = jnp.dtype(hidden_dtype).itemsize
    weight_bytes = 4 * (STATE_DIM * HIDDEN + HIDDEN * HIDDEN + HIDDEN * N_HEADS
                        + 2 * HIDDEN + N_HEADS)
    out_bytes_per_row = HIDDEN * h_item + ACTION_DIM * 4 + 1 * 4
    cost = pl.CostEstimate(
        flops=2 * B_pad * (STATE_DIM * HIDDEN + HIDDEN * HIDDEN + HIDDEN * N_HEADS),
        transcendentals=B_pad * (ACTION_DIM + 1),
        bytes_accessed=B_pad * (4 * STATE_DIM + out_bytes_per_row) + weight_bytes,
    )

    # Explicit VMEM budget: x pads its 2 lanes to 128 in VMEM; outputs pad to 128 lanes;
    # everything is double-buffered; plus headroom for h1/h2/heads/exp temporaries.
    io_bytes_per_row = 4 * 128 + h_item * 128 + 4 * 128 + 4 * 128
    est_vmem = 2 * TB * io_bytes_per_row + 8 * TB * 512 + (1 << 20)
    vmem_limit = int(min(max(est_vmem, 16 << 20), 48 << 20))

    hidden, probs, value = pl.pallas_call(
        _ppo_kernel,
        out_shape=(
            jax.ShapeDtypeStruct((B_pad, HIDDEN), hidden_dtype),
            jax.ShapeDtypeStruct((B_pad, ACTION_DIM), jnp.float32),
            jax.ShapeDtypeStruct((B_pad, 1), jnp.float32),
        ),
        grid=(n_blocks,),
        in_specs=[
            pl.BlockSpec((TB, STATE_DIM), lambda i: (i, 0)),          # x (batch-tiled)
            pl.BlockSpec((STATE_DIM, HIDDEN), lambda i: (0, 0)),      # w1 (resident)
            pl.BlockSpec((1, HIDDEN), lambda i: (0, 0)),              # b1
            pl.BlockSpec((HIDDEN, HIDDEN), lambda i: (0, 0)),         # w2
            pl.BlockSpec((1, HIDDEN), lambda i: (0, 0)),              # b2
            pl.BlockSpec((HIDDEN, N_HEADS), lambda i: (0, 0)),        # [wpi|wv]
            pl.BlockSpec((1, N_HEADS), lambda i: (0, 0)),             # [bpi|bv]
        ],
        out_specs=(
            pl.BlockSpec((TB, HIDDEN), lambda i: (i, 0)),             # hidden
            pl.BlockSpec((TB, ACTION_DIM), lambda i: (i, 0)),         # probs
            pl.BlockSpec((TB, 1), lambda i: (i, 0)),                  # value
        ),
        compiler_params=pltpu.CompilerParams(
            dimension_semantics=("parallel",),
            vmem_limit_bytes=vmem_limit,
        ),
        cost_estimate=cost,
    )(x, params["w1"], params["b1"], params["w2"], params["b2"], w_heads, b_heads)

    if B_pad != B:   # trailing-row trim only (contiguous, no-op when B_pad == B)
        hidden, probs, value = hidden[:B], probs[:B], value[:B]
    return hidden, probs, value


def init_params(key):
    """Deterministic init mimicking nn.Linear (uniform +/- 1/sqrt(fan_in))."""
    def linear(k, fan_in, fan_out):
        k1, k2 = jax.random.split(k)
        bound = 1.0 / jnp.sqrt(fan_in)
        w = jax.random.uniform(k1, (fan_in, fan_out), jnp.float32, -bound, bound)  # [in,out]
        b = jax.random.uniform(k2, (1, fan_out), jnp.float32, -bound, bound)
        return w, b

    k1, k2, k3, k4 = jax.random.split(key, 4)
    w1, b1 = linear(k1, STATE_DIM, HIDDEN)
    w2, b2 = linear(k2, HIDDEN, HIDDEN)
    wpi, bpi = linear(k3, HIDDEN, ACTION_DIM)
    wv, bv = linear(k4, HIDDEN, 1)
    return dict(w1=w1, b1=b1, w2=w2, b2=b2, wpi=wpi, bpi=bpi, wv=wv, bv=bv)


def ppo_reference(x, p):
    h1 = jnp.maximum(x @ p["w1"] + p["b1"], 0.0)
    h2 = jnp.maximum(h1 @ p["w2"] + p["b2"], 0.0)
    logits = h2 @ p["wpi"] + p["bpi"]
    probs = jax.nn.softmax(logits, axis=-1)
    val = h2 @ p["wv"] + p["bv"]
    return h2, probs, val


if __name__ == "__main__":
    key = jax.random.PRNGKey(0)
    kp, kx = jax.random.split(key)
    params = init_params(kp)

    B = 8
    x = jax.random.normal(kx, (B, STATE_DIM), dtype=jnp.float32)

    hidden, probs, value = ppo_forward_pallas(x, params)
    jax.block_until_ready((hidden, probs, value))

    h_ref, p_ref, v_ref = ppo_reference(x, params)
    assert hidden.shape == (B, HIDDEN)
    assert probs.shape == (B, ACTION_DIM)
    assert value.shape == (B, 1)
    # hidden is written back in bf16 (halves the dominant HBM writeback) -> looser tol.
    assert jnp.allclose(hidden.astype(jnp.float32), h_ref, atol=2e-2, rtol=2e-2)
    # value and probs stay f32 with the exact reciprocal -> tight tolerances.
    assert jnp.allclose(value, v_ref, atol=1e-5, rtol=1e-5)
    assert jnp.allclose(probs, p_ref, atol=1e-5, rtol=1e-5)
    assert jnp.allclose(jnp.sum(probs, axis=-1), 1.0, atol=1e-5)

    print("KERNEL_OK")
</pallas_src>

<mosaic_0001>
module attributes {stable_mosaic.version = 11 : i64} {
  func.func @_ppo_kernel(%arg0: i32, %arg1: memref<16x2xf32, #tpu.memory_space<vmem>>, %arg2: memref<2x64xf32, #tpu.memory_space<vmem>>, %arg3: memref<1x64xf32, #tpu.memory_space<vmem>>, %arg4: memref<64x64xf32, #tpu.memory_space<vmem>>, %arg5: memref<1x64xf32, #tpu.memory_space<vmem>>, %arg6: memref<64x5xf32, #tpu.memory_space<vmem>>, %arg7: memref<1x5xf32, #tpu.memory_space<vmem>>, %arg8: memref<16x64xbf16, #tpu.memory_space<vmem>>, %arg9: memref<16x4xf32, #tpu.memory_space<vmem>>, %arg10: memref<16x1xf32, #tpu.memory_space<vmem>>) attributes {dimension_semantics = [#tpu.dimension_semantics<parallel>], iteration_bounds = array<i64: 1>, scalar_prefetch = 0 : i64, scratch_operands = 0 : i64, tpu.core_type = #tpu.core_type<tc>, window_params = [{transform_indices = @transform_0, window_bounds = array<i64: 16, 2>}, {pipeline_mode = #tpu.pipeline_mode<synchronous>, transform_indices = @transform_1, window_bounds = array<i64: 2, 64>}, {pipeline_mode = #tpu.pipeline_mode<synchronous>, transform_indices = @transform_2, window_bounds = array<i64: 1, 64>}, {pipeline_mode = #tpu.pipeline_mode<synchronous>, transform_indices = @transform_3, window_bounds = array<i64: 64, 64>}, {pipeline_mode = #tpu.pipeline_mode<synchronous>, transform_indices = @transform_4, window_bounds = array<i64: 1, 64>}, {pipeline_mode = #tpu.pipeline_mode<synchronous>, transform_indices = @transform_5, window_bounds = array<i64: 64, 5>}, {pipeline_mode = #tpu.pipeline_mode<synchronous>, transform_indices = @transform_6, window_bounds = array<i64: 1, 5>}, {transform_indices = @transform_7, window_bounds = array<i64: 16, 64>}, {transform_indices = @transform_8, window_bounds = array<i64: 16, 4>}, {transform_indices = @transform_9, window_bounds = array<i64: 16, 1>}]} {
    %c0 = arith.constant 0 : index
    %c0_0 = arith.constant 0 : index
    %0 = vector.load %arg1[%c0, %c0_0] : memref<16x2xf32, #tpu.memory_space<vmem>>, vector<16x2xf32>
    %c0_1 = arith.constant 0 : index
    %c0_2 = arith.constant 0 : index
    %1 = vector.load %arg2[%c0_1, %c0_2] : memref<2x64xf32, #tpu.memory_space<vmem>>, vector<2x64xf32>
    %2 = vector.extract_strided_slice %0 {offsets = [0, 0], sizes = [16, 1], strides = [1, 1]} : vector<16x2xf32> to vector<16x1xf32>
    %3 = vector.extract_strided_slice %1 {offsets = [0, 0], sizes = [1, 64], strides = [1, 1]} : vector<2x64xf32> to vector<1x64xf32>
    %4 = vector.broadcast %2 : vector<16x1xf32> to vector<16x64xf32>
    %5 = vector.broadcast %3 : vector<1x64xf32> to vector<16x64xf32>
    %6 = arith.mulf %4, %5 : vector<16x64xf32>
    %7 = vector.extract_strided_slice %0 {offsets = [0, 1], sizes = [16, 1], strides = [1, 1]} : vector<16x2xf32> to vector<16x1xf32>
    %8 = vector.extract_strided_slice %1 {offsets = [1, 0], sizes = [1, 64], strides = [1, 1]} : vector<2x64xf32> to vector<1x64xf32>
    %9 = vector.broadcast %7 : vector<16x1xf32> to vector<16x64xf32>
    %10 = vector.broadcast %8 : vector<1x64xf32> to vector<16x64xf32>
    %11 = arith.mulf %9, %10 : vector<16x64xf32>
    %12 = arith.addf %6, %11 : vector<16x64xf32>
    %c0_3 = arith.constant 0 : index
    %c0_4 = arith.constant 0 : index
    %13 = vector.load %arg3[%c0_3, %c0_4] : memref<1x64xf32, #tpu.memory_space<vmem>>, vector<1x64xf32>
    %14 = vector.broadcast %13 : vector<1x64xf32> to vector<16x64xf32>
    %15 = arith.addf %12, %14 : vector<16x64xf32>
    %cst = arith.constant 0.000000e+00 : f32
    %16 = vector.broadcast %cst : f32 to vector<16x64xf32>
    %17 = arith.maximumf %15, %16 : vector<16x64xf32>
    %c0_5 = arith.constant 0 : index
    %c0_6 = arith.constant 0 : index
    %18 = vector.load %arg4[%c0_5, %c0_6] : memref<64x64xf32, #tpu.memory_space<vmem>>, vector<64x64xf32>
    %cst_7 = arith.constant dense<0.000000e+00> : vector<16x64xf32>
    %19 = tpu.matmul %17, %18, %cst_7 {dimension_numbers = #tpu.dot_dimension_numbers<[1], [0], [0], [1], [0, 0, 1, 1], [], []>} : vector<16x64xf32>, vector<64x64xf32>, vector<16x64xf32> -> vector<16x64xf32>
    %c0_8 = arith.constant 0 : index
    %c0_9 = arith.constant 0 : index
    %20 = vector.load %arg5[%c0_8, %c0_9] : memref<1x64xf32, #tpu.memory_space<vmem>>, vector<1x64xf32>
    %21 = vector.broadcast %20 : vector<1x64xf32> to vector<16x64xf32>
    %22 = arith.addf %19, %21 : vector<16x64xf32>
    %cst_10 = arith.constant 0.000000e+00 : f32
    %23 = vector.broadcast %cst_10 : f32 to vector<16x64xf32>
    %24 = arith.maximumf %22, %23 : vector<16x64xf32>
    %25 = arith.truncf %24 : vector<16x64xf32> to vector<16x64xbf16>
    %c0_11 = arith.constant 0 : index
    %c0_12 = arith.constant 0 : index
    %26 = vector.load %arg8[%c0_11, %c0_12] : memref<16x64xbf16, #tpu.memory_space<vmem>>, vector<16x64xbf16>
    tpu.vector_store %arg8[%c0_11, %c0_12], %25 {strides = array<i32>} : memref<16x64xbf16, #tpu.memory_space<vmem>>, vector<16x64xbf16>,
    %c0_13 = arith.constant 0 : index
    %c0_14 = arith.constant 0 : index
    %27 = vector.load %arg6[%c0_13, %c0_14] : memref<64x5xf32, #tpu.memory_space<vmem>>, vector<64x5xf32>
    %cst_15 = arith.constant dense<0.000000e+00> : vector<16x5xf32>
    %28 = tpu.matmul %24, %27, %cst_15 {dimension_numbers = #tpu.dot_dimension_numbers<[1], [0], [0], [1], [0, 0, 1, 1], [], []>} : vector<16x64xf32>, vector<64x5xf32>, vector<16x5xf32> -> vector<16x5xf32>
    %c0_16 = arith.constant 0 : index
    %c0_17 = arith.constant 0 : index
    %29 = vector.load %arg7[%c0_16, %c0_17] : memref<1x5xf32, #tpu.memory_space<vmem>>, vector<1x5xf32>
    %30 = vector.broadcast %29 : vector<1x5xf32> to vector<16x5xf32>
    %31 = arith.addf %28, %30 : vector<16x5xf32>
    %32 = vector.extract_strided_slice %31 {offsets = [0, 0], sizes = [16, 4], strides = [1, 1]} : vector<16x5xf32> to vector<16x4xf32>
    %33 = vector.extract_strided_slice %31 {offsets = [0, 4], sizes = [16, 1], strides = [1, 1]} : vector<16x5xf32> to vector<16x1xf32>
    %c0_18 = arith.constant 0 : index
    %c0_19 = arith.constant 0 : index
    %34 = vector.load %arg10[%c0_18, %c0_19] : memref<16x1xf32, #tpu.memory_space<vmem>>, vector<16x1xf32>
    tpu.vector_store %arg10[%c0_18, %c0_19], %33 {strides = array<i32>} : memref<16x1xf32, #tpu.memory_space<vmem>>, vector<16x1xf32>,
    %cst_20 = arith.constant dense<0xFF800000> : vector<16xf32>
    %35 = vector.multi_reduction <maximumf>, %32, %cst_20 [1] : vector<16x4xf32> to vector<16xf32>
    %36 = vector.shape_cast %35 : vector<16xf32> to vector<16x1xf32>
    %37 = vector.broadcast %36 : vector<16x1xf32> to vector<16x4xf32>
    %38 = arith.subf %32, %37 : vector<16x4xf32>
    %39 = math.exp %38 : vector<16x4xf32>
    %cst_21 = arith.constant dense<0.000000e+00> : vector<16xf32>
    %40 = vector.multi_reduction <add>, %39, %cst_21 [1] : vector<16x4xf32> to vector<16xf32>
    %41 = vector.shape_cast %40 : vector<16xf32> to vector<16x1xf32>
    %42 = tpu.reciprocal %41 : vector<16x1xf32> -> vector<16x1xf32>
    %43 = vector.broadcast %42 : vector<16x1xf32> to vector<16x4xf32>
    %44 = arith.mulf %39, %43 : vector<16x4xf32>
    %c0_22 = arith.constant 0 : index
    %c0_23 = arith.constant 0 : index
    %45 = vector.load %arg9[%c0_22, %c0_23] : memref<16x4xf32, #tpu.memory_space<vmem>>, vector<16x4xf32>
    tpu.vector_store %arg9[%c0_22, %c0_23], %44 {strides = array<i32>} : memref<16x4xf32, #tpu.memory_space<vmem>>, vector<16x4xf32>,
    return
  }
  func.func @transform_0(%arg0: i32) -> (i32, i32) {
    %c0_i32 = arith.constant 0 : i32
    %c0_i32_0 = arith.constant 0 : i32
    return %arg0, %c0_i32 : i32, i32
  }
  func.func @transform_1(%arg0: i32) -> (i32, i32) {
    %c0_i32 = arith.constant 0 : i32
    %c0_i32_0 = arith.constant 0 : i32
    %c0_i32_1 = arith.constant 0 : i32
    return %c0_i32, %c0_i32_0 : i32, i32
  }
  func.func @transform_2(%arg0: i32) -> (i32, i32) {
    %c0_i32 = arith.constant 0 : i32
    %c0_i32_0 = arith.constant 0 : i32
    %c0_i32_1 = arith.constant 0 : i32
    return %c0_i32, %c0_i32_0 : i32, i32
  }
  func.func @transform_3(%arg0: i32) -> (i32, i32) {
    %c0_i32 = arith.constant 0 : i32
    %c0_i32_0 = arith.constant 0 : i32
    %c0_i32_1 = arith.constant 0 : i32
    return %c0_i32, %c0_i32_0 : i32, i32
  }
  func.func @transform_4(%arg0: i32) -> (i32, i32) {
    %c0_i32 = arith.constant 0 : i32
    %c0_i32_0 = arith.constant 0 : i32
    %c0_i32_1 = arith.constant 0 : i32
    return %c0_i32, %c0_i32_0 : i32, i32
  }
  func.func @transform_5(%arg0: i32) -> (i32, i32) {
    %c0_i32 = arith.constant 0 : i32
    %c0_i32_0 = arith.constant 0 : i32
    %c0_i32_1 = arith.constant 0 : i32
    return %c0_i32, %c0_i32_0 : i32, i32
  }
  func.func @transform_6(%arg0: i32) -> (i32, i32) {
    %c0_i32 = arith.constant 0 : i32
    %c0_i32_0 = arith.constant 0 : i32
    %c0_i32_1 = arith.constant 0 : i32
    return %c0_i32, %c0_i32_0 : i32, i32
  }
  func.func @transform_7(%arg0: i32) -> (i32, i32) {
    %c0_i32 = arith.constant 0 : i32
    %c0_i32_0 = arith.constant 0 : i32
    return %arg0, %c0_i32 : i32, i32
  }
  func.func @transform_8(%arg0: i32) -> (i32, i32) {
    %c0_i32 = arith.constant 0 : i32
    %c0_i32_0 = arith.constant 0 : i32
    return %arg0, %c0_i32 : i32, i32
  }
  func.func @transform_9(%arg0: i32) -> (i32, i32) {
    %c0_i32 = arith.constant 0 : i32
    %c0_i32_0 = arith.constant 0 : i32
    return %arg0, %c0_i32 : i32, i32
  }
}

</mosaic_0001>

<bundles_post_ra>
// kernel: ppo_forward_pallas.1
= control target key start
LH: loop header
LB: loop body
LE: loop exit
PB: predicated region body
PF: predicated region fallthrough
CT: control target
= control target key end

     0   :  { %v268_v0 = vmov 0   ;;  %v269_v3 = vmov 1   ;;  %vm78_vm0 = vcmask 523264   ;;  %vm112_vm1 = vcmask 519168   ;;  %s270_s29 = smov 124   ;;  %s417_s0 = inlined_call_operand.vmem [shape: f32[16,2], index: 0, kind: input, shape index: {}]   ;;  %s418_s2 = inlined_call_operand.vmem [shape: f32[1,64], index: 2, kind: input, shape index: {}]   ;;  %s419_s4 = inlined_call_operand.vmem [shape: f32[1,64], index: 4, kind: input, shape index: {}]   ;;  %s420_s3 = inlined_call_operand.vmem [shape: f32[64,64], index: 3, kind: input, shape index: {}]   ;;  %s421_s5 = inlined_call_operand.vmem [shape: f32[64,5], index: 5, kind: input, shape index: {}]   ;;  %s422_s1 = inlined_call_operand.vmem [shape: f32[2,64], index: 1, kind: input, shape index: {}]   ;;  %s423_s6 = inlined_call_operand.vmem [shape: f32[1,5], index: 6, kind: input, shape index: {}]   ;;  %s424_s7 = inlined_call_operand.vmem [shape: bf16[16,64], index: 7, kind: output, shape index: {0}]   ;;  %s425_s9 = inlined_call_operand.vmem [shape: f32[16,1], index: 9, kind: output, shape index: {2}]   ;;  %s426_s8 = inlined_call_operand.vmem [shape: f32[16,4], index: 8, kind: output, shape index: {1}]  }
   0x1   :  { %255 = vset.pattern.permute.xlu1 %v268_v0  ;;  %253 = vset.pattern.permute.xlu0 %v268_v0  ;;  %v30_v1 = vld [vmem:[%s417_s0 + $0x8] sm:$0xff]  ;;  %v29_v2 = vld [vmem:[%s417_s0] sm:$0xff]  ;;  %v73_v4 = vld [vmem:[%s420_s3 + $0x38] sm:$0xff]  ;;  %vm167_vm2 = vcmask 31744   ;;  %vm164_vm3 = vcmask 7168  }
   0x2   :  { %39 = vperm.xlu0 %253, %v30_v1   ;;  %34 = vperm.xlu1 %255, %v29_v2   ;;  %v72_v5 = vld [vmem:[%s420_s3 + $0x30] sm:$0xff]  ;;  %v71_v6 = vld [vmem:[%s420_s3 + $0x28] sm:$0xff]  ;;  %v70_v7 = vld [vmem:[%s420_s3 + $0x20] sm:$0xff] }
   0x3   :  { %93 = vmatpush.msra.mxu0 %v73_v4  ;;  %234 = vmatpush.msra.mxu2 %v73_v4  ;;  %v69_v8 = vld [vmem:[%s420_s3 + $0x18] sm:$0xff]  ;;  %v68_v9 = vld [vmem:[%s420_s3 + $0x10] sm:$0xff]  ;;  %v67_v10 = vld [vmem:[%s420_s3 + $0x8] sm:$0xff] }
   0x4   :  { %v66_v11 = vld [vmem:[%s420_s3] sm:$0xff]  ;;  %v122_v12 = vld [vmem:[%s421_s5 + $0x38] sm:$0xff]  ;;  %v121_v13 = vld [vmem:[%s421_s5 + $0x30] sm:$0xff] }
   0x5   :  { %94 = vmatpush.msra.mxu0 %v72_v5  ;;  %235 = vmatpush.msra.mxu2 %v72_v5  ;;  %v120_v14 = vld [vmem:[%s421_s5 + $0x28] sm:$0xff]  ;;  %v119_v15 = vld [vmem:[%s421_s5 + $0x20] sm:$0xff]  ;;  %v118_v16 = vld [vmem:[%s421_s5 + $0x18] sm:$0xff] }
   0x6   :  { %141 = vmatpush.msra.mxu1 %v122_v12  ;;  %242 = vmatpush.msra.mxu3 %v122_v12  ;;  %v31_v19 = vld [vmem:[%s422_s1] sm:$0x3]  ;;  %v117_v35 = vld [vmem:[%s421_s5 + $0x10] sm:$0xff]  ;;  %v116_v36 = vld [vmem:[%s421_s5 + $0x8] sm:$0xff] }
   0x7   :  { %95 = vmatpush.msra.mxu0 %v71_v6  ;;  %236 = vmatpush.msra.mxu2 %v71_v6  ;;  %v42_v20 = vperm.slane %v31_v19, 0  ;;  %v53_v21 = vperm.slane %v31_v19, 1  ;;  %v257_v28 = vld [vmem:[%s418_s2] ss:$0 sm:$0xff] }
   0x8   :  { %142 = vmatpush.msra.mxu1 %v121_v13  ;;  %243 = vmatpush.msra.mxu3 %v121_v13  ;;  %v115_v37 = vld [vmem:[%s421_s5] sm:$0xff] }
   0x9   :  { %96 = vmatpush.msra.mxu0 %v70_v7  ;;  %237 = vmatpush.msra.mxu2 %v70_v7  ;;  %v258_v38 = vld [vmem:[%s419_s4] ss:$0 sm:$0xff] }
   0xa   :  { %254 = vset.pattern.permute.xlu0 %v269_v3  ;;  %256 = vset.pattern.permute.xlu1 %v269_v3  ;;  %v259_v47 = vld [vmem:[%s423_s6] ss:$0 sm:$0xff] }
   0xb   :  { %50 = vperm.xlu0 %254, %v30_v1   ;;  %46 = vperm.xlu1 %256, %v29_v2  }
   0xc   :  { %97 = vmatpush.msra.mxu0 %v69_v8  ;;  %238 = vmatpush.msra.mxu2 %v69_v8 }
   0xd   :  { %143 = vmatpush.msra.mxu1 %v120_v14  ;;  %244 = vmatpush.msra.mxu3 %v120_v14 }
   0xe   :  { %98 = vmatpush.msra.mxu0 %v68_v9  ;;  %239 = vmatpush.msra.mxu2 %v68_v9 }
   0xf   :  { %144 = vmatpush.msra.mxu1 %v119_v15  ;;  %245 = vmatpush.msra.mxu3 %v119_v15 }
  0x10   :  { %99 = vmatpush.msra.mxu0 %v67_v10  ;;  %240 = vmatpush.msra.mxu2 %v67_v10 }
  0x11   :  { %145 = vmatpush.msra.mxu1 %v118_v16  ;;  %246 = vmatpush.msra.mxu3 %v118_v16 }
  0x12   :  { %100 = vmatpush.msra.mxu0 %v66_v11  ;;  %241 = vmatpush.msra.mxu2 %v66_v11 }
  0x13   :  { %146 = vmatpush.msra.mxu1 %v117_v35  ;;  %247 = vmatpush.msra.mxu3 %v117_v35 }
  0x15   :  { %147 = vmatpush.msra.mxu1 %v116_v36  ;;  %248 = vmatpush.msra.mxu3 %v116_v36 }
  0x17   :  { %148 = vmatpush.msra.mxu1 %v115_v37  ;;  %249 = vmatpush.msra.mxu3 %v115_v37 }
  0x74   :  { %v40_v17 = vpop.permute.xlu0 %39  ;;  %v35_v18 = vpop.permute.xlu1 %34 }
  0x75   :  { %v44_v24 = vmul.f32 %v42_v20, %v40_v17  ;;  %v43_v25 = vmul.f32 %v42_v20, %v35_v18 }
  0x7d   :  { %v51_v22 = vpop.permute.xlu0 %50  ;;  %v47_v23 = vpop.permute.xlu1 %46 }
  0x7e   :  { %v55_v26 = vmul.f32 %v53_v21, %v51_v22  ;;  %v54_v27 = vmul.f32 %v53_v21, %v47_v23 }
  0x80   :  { %v57_v29 = vadd.f32 %v55_v26, %v44_v24  ;;  %v56_v30 = vadd.f32 %v54_v27, %v43_v25 }
  0x82   :  { %v62_v31 = vadd.f32 %v257_v28, %v56_v30  ;;  %v63_v32 = vadd.f32 %v257_v28, %v57_v29 }
  0x84   :  { %v64_v33 = vmax.f32 %v62_v31, 0.0  ;;  %v65_v34 = vmax.f32 %v63_v32, 0.0 }
  0x86   :  { %230 = vmatmul.msk.f32.vlgmr.msra.gmra.mxu0 %vm78_vm0, %v64_v33  ;;  %231 = vmatmul.msk.f32.vlgmr.msra.gmra.mxu2 %vm78_vm0, %v65_v34 }
 0x103   :  { %v102_v39 = vpop.f32.mrf.mxu0 }
 0x104   :  { %v103_v40 = vadd.f32 %v258_v38, %v102_v39 }
 0x106   :  { %v108_v41 = vmax.f32 %v103_v40, 0.0 }
 0x108   :  { %v110_v42 = vpack.c.bf16 %v108_v41, %v108_v41  ;;  %232 = vmatmul.msk.f32.vlgmr.msra.gmra.mxu1 %vm78_vm0, %v108_v41 }
 0x109   :  { %v105_v43 = vpop.f32.mrf.mxu2 }
 0x10a   :  { %113 = vst.msk [vmem:[%s424_s7] sm:$0xf] %vm112_vm1, %v110_v42  ;;  %v106_v44 = vadd.f32 %v258_v38, %v105_v43 }
 0x10c   :  { %v109_v45 = vmax.f32 %v106_v44, 0.0 }
 0x10e   :  { %v111_v46 = vpack.c.bf16 %v109_v45, %v109_v45  ;;  %233 = vmatmul.msk.f32.vlgmr.msra.gmra.mxu3 %vm78_vm0, %v109_v45 }
 0x110   :  { %114 = vst.msk [vmem:[%s424_s7 + $0x4] sm:$0xf] %vm112_vm1, %v111_v46 }
 0x185   :  { %v150_v48 = vpop.f32.mrf.mxu1 }
 0x186   :  { %v151_v49 = vadd.f32 %v259_v47, %v150_v48 }
 0x188   :  { %158 = vrot.lane.b32.xlu0 %v151_v49, %s270_s29  ;;  %v168_v50 = vsel %vm167_vm2, %v151_v49, -inf }
 0x189   :  { %169 = vmax.xlane.f32.xlu2 %v168_v50 }
 0x191   :  { %v153_v51 = vpop.f32.mrf.mxu3 }
 0x192   :  { %v154_v52 = vadd.f32 %v259_v47, %v153_v51 }
 0x194   :  { %v171_v53 = vsel %vm167_vm2, %v154_v52, -inf }
 0x195   :  { %172 = vmax.xlane.f32.xlu2 %v171_v53 }
 0x1fa   :  { %v159_v54 = vpop.permute.xlu0 %158 }
 0x1fb   :  { %165 = vst.msk [vmem:[%s425_s9] sm:$0xff] %vm164_vm3, %v159_v54 }
 0x1fc   :  { %v170_v55 = vpop.xlane.xlu2 %169 }
 0x1fd   :  { %v174_v56 = vsub.f32 %v151_v49, %v170_v55 }
 0x1ff   :  { %v176_v57 = vmul.f32 1.442695, %v174_v56 }
 0x201   :  { %260 = vpow2.f32 %v176_v57 }
 0x207   :  { %v261_v58 = vpop.eup %260 }
 0x208   :  { %v173_v59 = vpop.xlane.xlu2 %172  ;;  %v180_v60 = vsel %vm167_vm2, %v261_v58, 0.0 }
 0x209   :  { %v175_v61 = vsub.f32 %v154_v52, %v173_v59  ;;  %181 = vadd.xlane.f32.xlu1 %v180_v60 }
 0x20b   :  { %v178_v62 = vmul.f32 1.442695, %v175_v61 }
 0x20d   :  { %262 = vpow2.f32 %v178_v62 }
 0x213   :  { %v263_v63 = vpop.eup %262 }
 0x214   :  { %v183_v0 = vsel %vm167_vm2, %v263_v63, 0.0 }
 0x215   :  { %184 = vadd.xlane.f32.xlu2 %v183_v0 }
 0x22d   :  { %160 = vrot.lane.b32.xlu2 %v154_v52, %s270_s29 }
 0x27c   :  { %v182_v1 = vpop.xlane.xlu1 %181 }
 0x27d   :  { %264 = vrcp.f32 %v182_v1  ;;  %v197_v5 = vand.u32 2147483648, %v182_v1  ;;  %v195_v7 = vand.u32 2147483647, %v182_v1  ;;  %vm191_vm5 = vweird.f32 %v182_v1 }
 0x27f   :  { %v198_v10 = vor.u32 1.1754944e-38, %v197_v5  ;;  %vm196_vm7 = vcmp.eq.f32.partialorder %v195_v7, 8.507059e+37 }
 0x283   :  { %v265_v2 = vpop.eup %264 }
 0x284   :  { %v187_v3 = vmul.f32 %v265_v2, %v182_v1  ;;  %vm192_vm4 = vweird.f32 %v265_v2 }
 0x285   :  { %vm193_vm6 = vmor %vm191_vm5, %vm192_vm4 }
 0x286   :  { %v188_v4 = vsub.f32 1.0, %v187_v3 }
 0x288   :  { %v189_v6 = vmul.f32 %v265_v2, %v188_v4  ;;  %v185_v8 = vpop.xlane.xlu2 %184 }
 0x289   :  { %266 = vrcp.f32 %v185_v8  ;;  %v211_v18 = vand.u32 2147483648, %v185_v8  ;;  %v209_v20 = vand.u32 2147483647, %v185_v8  ;;  %vm205_vm9 = vweird.f32 %v185_v8 }
 0x28a   :  { %v190_v9 = vadd.f32 %v265_v2, %v189_v6 }
 0x28b   :  { %v212_v22 = vor.u32 1.1754944e-38, %v211_v18  ;;  %vm210_vm11 = vcmp.eq.f32.partialorder %v209_v20, 8.507059e+37 }
 0x28c   :  { %v194_v11 = vsel %vm193_vm6, %v265_v2, %v190_v9 }
 0x28d   :  { %v199_v12 = vsel %vm196_vm7, %v198_v10, %v194_v11 }
 0x28e   :  { %v214_v13 = vmul.f32 %v261_v58, %v199_v12 }
 0x28f   :  { %v267_v14 = vpop.eup %266 }
 0x290   :  { %216 = vst.msk [vmem:[%s426_s8] sm:$0xff] %vm167_vm2, %v214_v13  ;;  %v201_v15 = vmul.f32 %v267_v14, %v185_v8  ;;  %v161_v16 = vpop.permute.xlu2 %160  ;;  %vm206_vm8 = vweird.f32 %v267_v14 }
 0x291   :  { %166 = vst.msk [vmem:[%s425_s9 + $0x8] sm:$0xff] %vm164_vm3, %v161_v16  ;;  %vm207_vm10 = vmor %vm205_vm9, %vm206_vm8 }
 0x292   :  { %v202_v17 = vsub.f32 1.0, %v201_v15 }
 0x294   :  { %v203_v19 = vmul.f32 %v267_v14, %v202_v17 }
 0x296   :  { %v204_v21 = vadd.f32 %v267_v14, %v203_v19 }
 0x298   :  { %v208_v23 = vsel %vm207_vm10, %v267_v14, %v204_v21 }
 0x299   :  { %v213_v24 = vsel %vm210_vm11, %v212_v22, %v208_v23 }
 0x29a   :  { %v215_v25 = vmul.f32 %v263_v63, %v213_v24 }
 0x29c   :  { %217 = vst.msk [vmem:[%s426_s8 + $0x8] sm:$0xff] %vm167_vm2, %v215_v25 }

</bundles_post_ra>
